<compile_context>
chip_gen: v7x
topology: tpu7x:2x2x1
jax: 0.10.0
libtpu: 0.0.40
codegen_flags: <defaults>
</compile_context>

<pallas_src>
import jax
import jax.numpy as jnp
from jax.experimental import pallas as pl
from jax.experimental.pallas import tpu as pltpu


def _deeponet_kernel(xb_ref, xtT_ref,
                     wb1_ref, bb1_ref, wb2_ref, bb2_ref,
                     wt1T_ref, bt1T_ref, wt2T_ref, bt2T_ref,
                     bias_ref, out_ref):
    """One (batch b, query-tile n) grid step.

    The trunk is computed in transposed (W, TILE_N) layout so query points live
    on the lane axis: the dominant W x W matmul and the final combine are both
    canonical MXU (M,K)x(K,N) shapes and the output store is lane-dense.
    """
    xtT = xtT_ref[0]                       # (Dt, TILE_N) f32 — this batch's tile
    dt = xtT.shape[0]

    # ---- trunk layer 1 (K = Dt is tiny): VPU outer-product accumulation ----
    wt1T = wt1T_ref[...]                   # (W, Dt) f32
    h = wt1T[:, 0:1] * xtT[0:1, :]         # (W, TILE_N)
    for d in range(1, dt):                 # dt is static (trunk_dim)
        h = h + wt1T[:, d:d + 1] * xtT[d:d + 1, :]
    h = jnp.maximum(h + bt1T_ref[...], 0.0)                 # (W, TILE_N) f32

    # ---- trunk layer 2: dominant matmul; bf16 operands, f32 accumulation ----
    h = jnp.dot(wt2T_ref[...], h.astype(jnp.bfloat16),
                preferred_element_type=jnp.float32)          # (W, TILE_N) f32
    h = jnp.maximum(h + bt2T_ref[...], 0.0)                  # f32 elementwise

    # ---- branch MLP for this batch: (1, Db) -> (1, W); tiny, keep f32 ----
    xb = xb_ref[0]                                           # (1, Db)
    hb = jnp.dot(xb, wb1_ref[...],
                 preferred_element_type=jnp.float32) + bb1_ref[...]
    hb = jnp.maximum(hb, 0.0)
    hb = jnp.dot(hb, wb2_ref[...],
                 preferred_element_type=jnp.float32) + bb2_ref[...]   # (1, W)

    # ---- per-batch combine on the MXU: (1, W) @ (W, TILE_N) -> (1, TILE_N) ----
    out = jnp.dot(hb, h, preferred_element_type=jnp.float32) + bias_ref[...]
    out_ref[0] = out.astype(out_ref.dtype)                   # lane-dense store


def deeponet_forward(x_branch, x_trunk, params, *, max_tile_n=512):
    """x_branch: (B, Db), x_trunk: (B, N, Dt) -> (B, N, 1)."""
    B, N, Dt = x_trunk.shape
    Db = x_branch.shape[1]
    W = params["wt2"].shape[0]

    LANE = 128
    n128 = ((N + LANE - 1) // LANE) * LANE
    tile_n = min(max_tile_n, n128)                 # lane-aligned query tile
    n_pad = ((N + tile_n - 1) // tile_n) * tile_n
    n_tiles = n_pad // tile_n

    # Pad query points and put them on the lane axis: (B, N, Dt) -> (B, Dt, Npad).
    xt = x_trunk
    if n_pad != N:
        xt = jnp.pad(xt, ((0, 0), (0, n_pad - N), (0, 0)))
    xtT = jnp.transpose(xt, (0, 2, 1))
    # TODO(synk): for very large N this wrapper transpose is one extra HBM pass
    # over x_trunk; fold the Dt-transpose into the kernel if it ever dominates.

    xb3 = x_branch.reshape(B, 1, Db)

    wt1T = params["wt1"].T                          # (W, Dt)  f32
    bt1T = params["bt1"].T                          # (W, 1)   f32
    wt2T = params["wt2"].T.astype(jnp.bfloat16)     # (W, W)   bf16 MXU operand
    bt2T = params["bt2"].T                          # (W, 1)   f32

    const = lambda b, n: (0, 0)
    out = pl.pallas_call(
        _deeponet_kernel,
        grid=(B, n_tiles),
        in_specs=[
            pl.BlockSpec((1, 1, Db), lambda b, n: (b, 0, 0)),        # x_branch
            pl.BlockSpec((1, Dt, tile_n), lambda b, n: (b, 0, n)),   # x_trunk^T
            pl.BlockSpec((Db, W), const),                            # wb1
            pl.BlockSpec((1, W), const),                             # bb1
            pl.BlockSpec((W, W), const),                             # wb2
            pl.BlockSpec((1, W), const),                             # bb2
            pl.BlockSpec((W, Dt), const),                            # wt1T
            pl.BlockSpec((W, 1), const),                             # bt1T
            pl.BlockSpec((W, W), const),                             # wt2T (bf16)
            pl.BlockSpec((W, 1), const),                             # bt2T
            pl.BlockSpec((1, 1), const),                             # bias
        ],
        out_specs=pl.BlockSpec((1, 1, tile_n), lambda b, n: (b, 0, n)),
        out_shape=jax.ShapeDtypeStruct((B, 1, n_pad), x_trunk.dtype),
        compiler_params=pltpu.CompilerParams(
            dimension_semantics=("parallel", "parallel"),
            vmem_limit_bytes=32 * 1024 * 1024),
    )(xb3, xtT,
      params["wb1"], params["bb1"], params["wb2"], params["bb2"],
      wt1T, bt1T, wt2T, bt2T,
      params["bias"])

    # (B, 1, Npad) lane-dense slab -> (B, N, 1); pure layout plumbing.
    return out[:, 0, :N][..., None]


def deeponet_reference(x_branch, x_trunk, p):
    """Pure-JAX reference mirroring the PyTorch forward() (is_sw == False)."""
    ht = jnp.maximum(x_trunk @ p["wt1"] + p["bt1"], 0.0)   # TrLinM1 + relu
    ht = jnp.maximum(ht @ p["wt2"] + p["bt2"], 0.0)        # TrLinM2 + relu
    hb = jnp.maximum(x_branch @ p["wb1"] + p["bb1"], 0.0)  # BrLinM1 + relu
    hb = hb @ p["wb2"] + p["bb2"]                          # BrLinM2 (no act)
    return jnp.sum(ht * hb[:, None, :], axis=-1, keepdims=True) + p["bias"][0, 0]


def init_params(key, branch_dim, trunk_dim, width):
    ks = jax.random.split(key, 8)

    def lin(kw, kb, fan_in, fan_out):
        scale = 1.0 / jnp.sqrt(jnp.float32(fan_in))
        w = jax.random.normal(kw, (fan_in, fan_out), jnp.float32) * scale
        b = jax.random.normal(kb, (1, fan_out), jnp.float32) * scale
        return w, b

    wb1, bb1 = lin(ks[0], ks[1], branch_dim, width)   # BrLinM1
    wb2, bb2 = lin(ks[2], ks[3], width, width)        # BrLinM2
    wt1, bt1 = lin(ks[4], ks[5], trunk_dim, width)    # TrLinM1
    wt2, bt2 = lin(ks[6], ks[7], width, width)        # TrLinM2
    bias = jnp.zeros((1, 1), jnp.float32)             # zero-init in PyTorch module
    return dict(wb1=wb1, bb1=bb1, wb2=wb2, bb2=bb2,
                wt1=wt1, bt1=bt1, wt2=wt2, bt2=bt2, bias=bias)


if __name__ == "__main__":
    B, N = 2, 8                  # batch, number of trunk query points
    branch_dim, trunk_dim = 16, 2
    width = 128                  # lane-friendly hidden width (constructor arg)

    key = jax.random.PRNGKey(0)
    k_br, k_tr, k_p = jax.random.split(key, 3)

    x_branch = jax.random.normal(k_br, (B, branch_dim), jnp.float32)
    x_trunk = jax.random.normal(k_tr, (B, N, trunk_dim), jnp.float32)
    params = init_params(k_p, branch_dim, trunk_dim, width)

    out = deeponet_forward(x_branch, x_trunk, params)
    out = jax.block_until_ready(out)

    ref = deeponet_reference(x_branch, x_trunk, params)
    assert out.shape == (B, N, 1), out.shape
    # bf16 MXU operands on the dominant matmul -> loosened tolerance.
    assert jnp.allclose(out, ref, rtol=2e-2, atol=2e-2), \
        f"max abs diff = {jnp.max(jnp.abs(out - ref))}"

    print("KERNEL_OK")
</pallas_src>

<mosaic_0001>
module attributes {stable_mosaic.version = 11 : i64} {
  func.func @_deeponet_kernel(%arg0: i32, %arg1: i32, %arg2: memref<1x1x16xf32, #tpu.memory_space<vmem>>, %arg3: memref<1x2x128xf32, #tpu.memory_space<vmem>>, %arg4: memref<16x128xf32, #tpu.memory_space<vmem>>, %arg5: memref<1x128xf32, #tpu.memory_space<vmem>>, %arg6: memref<128x128xf32, #tpu.memory_space<vmem>>, %arg7: memref<1x128xf32, #tpu.memory_space<vmem>>, %arg8: memref<128x2xf32, #tpu.memory_space<vmem>>, %arg9: memref<128x1xf32, #tpu.memory_space<vmem>>, %arg10: memref<128x128xbf16, #tpu.memory_space<vmem>>, %arg11: memref<128x1xf32, #tpu.memory_space<vmem>>, %arg12: memref<1x1xf32, #tpu.memory_space<vmem>>, %arg13: memref<1x1x128xf32, #tpu.memory_space<vmem>>) attributes {dimension_semantics = [#tpu.dimension_semantics<parallel>, #tpu.dimension_semantics<parallel>], iteration_bounds = array<i64: 2, 1>, scalar_prefetch = 0 : i64, scratch_operands = 0 : i64, tpu.core_type = #tpu.core_type<tc>, window_params = [{transform_indices = @transform_0, window_bounds = array<i64: 1, 1, 16>}, {transform_indices = @transform_1, window_bounds = array<i64: 1, 2, 128>}, {pipeline_mode = #tpu.pipeline_mode<synchronous>, transform_indices = @transform_2, window_bounds = array<i64: 16, 128>}, {pipeline_mode = #tpu.pipeline_mode<synchronous>, transform_indices = @transform_3, window_bounds = array<i64: 1, 128>}, {pipeline_mode = #tpu.pipeline_mode<synchronous>, transform_indices = @transform_4, window_bounds = array<i64: 128, 128>}, {pipeline_mode = #tpu.pipeline_mode<synchronous>, transform_indices = @transform_5, window_bounds = array<i64: 1, 128>}, {pipeline_mode = #tpu.pipeline_mode<synchronous>, transform_indices = @transform_6, window_bounds = array<i64: 128, 2>}, {pipeline_mode = #tpu.pipeline_mode<synchronous>, transform_indices = @transform_7, window_bounds = array<i64: 128, 1>}, {pipeline_mode = #tpu.pipeline_mode<synchronous>, transform_indices = @transform_8, window_bounds = array<i64: 128, 128>}, {pipeline_mode = #tpu.pipeline_mode<synchronous>, transform_indices = @transform_9, window_bounds = array<i64: 128, 1>}, {pipeline_mode = #tpu.pipeline_mode<synchronous>, transform_indices = @transform_10, window_bounds = array<i64: 1, 1>}, {transform_indices = @transform_11, window_bounds = array<i64: 1, 1, 128>}]} {
    %c0 = arith.constant 0 : index
    %c0_0 = arith.constant 0 : index
    %c0_1 = arith.constant 0 : index
    %0 = vector.load %arg3[%c0, %c0_0, %c0_1] : memref<1x2x128xf32, #tpu.memory_space<vmem>>, vector<1x2x128xf32>
    %1 = vector.shape_cast %0 : vector<1x2x128xf32> to vector<2x128xf32>
    %c0_2 = arith.constant 0 : index
    %c0_3 = arith.constant 0 : index
    %2 = vector.load %arg8[%c0_2, %c0_3] : memref<128x2xf32, #tpu.memory_space<vmem>>, vector<128x2xf32>
    %3 = vector.extract_strided_slice %2 {offsets = [0, 0], sizes = [128, 1], strides = [1, 1]} : vector<128x2xf32> to vector<128x1xf32>
    %4 = vector.extract_strided_slice %1 {offsets = [0, 0], sizes = [1, 128], strides = [1, 1]} : vector<2x128xf32> to vector<1x128xf32>
    %5 = vector.broadcast %3 : vector<128x1xf32> to vector<128x128xf32>
    %6 = vector.broadcast %4 : vector<1x128xf32> to vector<128x128xf32>
    %7 = arith.mulf %5, %6 : vector<128x128xf32>
    %8 = vector.extract_strided_slice %2 {offsets = [0, 1], sizes = [128, 1], strides = [1, 1]} : vector<128x2xf32> to vector<128x1xf32>
    %9 = vector.extract_strided_slice %1 {offsets = [1, 0], sizes = [1, 128], strides = [1, 1]} : vector<2x128xf32> to vector<1x128xf32>
    %10 = vector.broadcast %8 : vector<128x1xf32> to vector<128x128xf32>
    %11 = vector.broadcast %9 : vector<1x128xf32> to vector<128x128xf32>
    %12 = arith.mulf %10, %11 : vector<128x128xf32>
    %13 = arith.addf %7, %12 : vector<128x128xf32>
    %c0_4 = arith.constant 0 : index
    %c0_5 = arith.constant 0 : index
    %14 = vector.load %arg9[%c0_4, %c0_5] : memref<128x1xf32, #tpu.memory_space<vmem>>, vector<128x1xf32>
    %15 = vector.broadcast %14 : vector<128x1xf32> to vector<128x128xf32>
    %16 = arith.addf %13, %15 : vector<128x128xf32>
    %cst = arith.constant 0.000000e+00 : f32
    %17 = vector.broadcast %cst : f32 to vector<128x128xf32>
    %18 = arith.maximumf %16, %17 : vector<128x128xf32>
    %c0_6 = arith.constant 0 : index
    %c0_7 = arith.constant 0 : index
    %19 = vector.load %arg10[%c0_6, %c0_7] : memref<128x128xbf16, #tpu.memory_space<vmem>>, vector<128x128xbf16>
    %20 = arith.truncf %18 : vector<128x128xf32> to vector<128x128xbf16>
    %cst_8 = arith.constant dense<0.000000e+00> : vector<128x128xf32>
    %21 = tpu.matmul %19, %20, %cst_8 {dimension_numbers = #tpu.dot_dimension_numbers<[1], [0], [0], [1], [0, 0, 1, 1], [], []>} : vector<128x128xbf16>, vector<128x128xbf16>, vector<128x128xf32> -> vector<128x128xf32>
    %c0_9 = arith.constant 0 : index
    %c0_10 = arith.constant 0 : index
    %22 = vector.load %arg11[%c0_9, %c0_10] : memref<128x1xf32, #tpu.memory_space<vmem>>, vector<128x1xf32>
    %23 = vector.broadcast %22 : vector<128x1xf32> to vector<128x128xf32>
    %24 = arith.addf %21, %23 : vector<128x128xf32>
    %cst_11 = arith.constant 0.000000e+00 : f32
    %25 = vector.broadcast %cst_11 : f32 to vector<128x128xf32>
    %26 = arith.maximumf %24, %25 : vector<128x128xf32>
    %c0_12 = arith.constant 0 : index
    %c0_13 = arith.constant 0 : index
    %c0_14 = arith.constant 0 : index
    %27 = vector.load %arg2[%c0_12, %c0_13, %c0_14] : memref<1x1x16xf32, #tpu.memory_space<vmem>>, vector<1x1x16xf32>
    %28 = vector.shape_cast %27 : vector<1x1x16xf32> to vector<1x16xf32>
    %c0_15 = arith.constant 0 : index
    %c0_16 = arith.constant 0 : index
    %29 = vector.load %arg4[%c0_15, %c0_16] : memref<16x128xf32, #tpu.memory_space<vmem>>, vector<16x128xf32>
    %cst_17 = arith.constant dense<0.000000e+00> : vector<1x128xf32>
    %30 = tpu.matmul %28, %29, %cst_17 {dimension_numbers = #tpu.dot_dimension_numbers<[1], [0], [0], [1], [0, 0, 1, 1], [], []>} : vector<1x16xf32>, vector<16x128xf32>, vector<1x128xf32> -> vector<1x128xf32>
    %c0_18 = arith.constant 0 : index
    %c0_19 = arith.constant 0 : index
    %31 = vector.load %arg5[%c0_18, %c0_19] : memref<1x128xf32, #tpu.memory_space<vmem>>, vector<1x128xf32>
    %32 = arith.addf %30, %31 : vector<1x128xf32>
    %cst_20 = arith.constant 0.000000e+00 : f32
    %33 = vector.broadcast %cst_20 : f32 to vector<1x128xf32>
    %34 = arith.maximumf %32, %33 : vector<1x128xf32>
    %c0_21 = arith.constant 0 : index
    %c0_22 = arith.constant 0 : index
    %35 = vector.load %arg6[%c0_21, %c0_22] : memref<128x128xf32, #tpu.memory_space<vmem>>, vector<128x128xf32>
    %cst_23 = arith.constant dense<0.000000e+00> : vector<1x128xf32>
    %36 = tpu.matmul %34, %35, %cst_23 {dimension_numbers = #tpu.dot_dimension_numbers<[1], [0], [0], [1], [0, 0, 1, 1], [], []>} : vector<1x128xf32>, vector<128x128xf32>, vector<1x128xf32> -> vector<1x128xf32>
    %c0_24 = arith.constant 0 : index
    %c0_25 = arith.constant 0 : index
    %37 = vector.load %arg7[%c0_24, %c0_25] : memref<1x128xf32, #tpu.memory_space<vmem>>, vector<1x128xf32>
    %38 = arith.addf %36, %37 : vector<1x128xf32>
    %cst_26 = arith.constant dense<0.000000e+00> : vector<1x128xf32>
    %39 = tpu.matmul %38, %26, %cst_26 {dimension_numbers = #tpu.dot_dimension_numbers<[1], [0], [0], [1], [0, 0, 1, 1], [], []>} : vector<1x128xf32>, vector<128x128xf32>, vector<1x128xf32> -> vector<1x128xf32>
    %c0_27 = arith.constant 0 : index
    %c0_28 = arith.constant 0 : index
    %40 = vector.load %arg12[%c0_27, %c0_28] : memref<1x1xf32, #tpu.memory_space<vmem>>, vector<1x1xf32>
    %41 = vector.broadcast %40 : vector<1x1xf32> to vector<1x128xf32>
    %42 = arith.addf %39, %41 : vector<1x128xf32>
    %c0_29 = arith.constant 0 : index
    %c0_30 = arith.constant 0 : index
    %c0_31 = arith.constant 0 : index
    %43 = vector.load %arg13[%c0_29, %c0_30, %c0_31] : memref<1x1x128xf32, #tpu.memory_space<vmem>>, vector<1x1x128xf32>
    %44 = vector.shape_cast %43 : vector<1x1x128xf32> to vector<1x128xf32>
    %45 = vector.shape_cast %42 : vector<1x128xf32> to vector<1x1x128xf32>
    tpu.vector_store %arg13[%c0_29, %c0_30, %c0_31], %45 {strides = array<i32>} : memref<1x1x128xf32, #tpu.memory_space<vmem>>, vector<1x1x128xf32>,
    return
  }
  func.func @transform_0(%arg0: i32, %arg1: i32) -> (i32, i32, i32) {
    %c0_i32 = arith.constant 0 : i32
    %c0_i32_0 = arith.constant 0 : i32
    %c0_i32_1 = arith.constant 0 : i32
    return %arg0, %c0_i32, %c0_i32_0 : i32, i32, i32
  }
  func.func @transform_1(%arg0: i32, %arg1: i32) -> (i32, i32, i32) {
    %c0_i32 = arith.constant 0 : i32
    %c0_i32_0 = arith.constant 0 : i32
    return %arg0, %c0_i32, %arg1 : i32, i32, i32
  }
  func.func @transform_2(%arg0: i32, %arg1: i32) -> (i32, i32) {
    %c0_i32 = arith.constant 0 : i32
    %c0_i32_0 = arith.constant 0 : i32
    %c0_i32_1 = arith.constant 0 : i32
    return %c0_i32, %c0_i32_0 : i32, i32
  }
  func.func @transform_3(%arg0: i32, %arg1: i32) -> (i32, i32) {
    %c0_i32 = arith.constant 0 : i32
    %c0_i32_0 = arith.constant 0 : i32
    %c0_i32_1 = arith.constant 0 : i32
    return %c0_i32, %c0_i32_0 : i32, i32
  }
  func.func @transform_4(%arg0: i32, %arg1: i32) -> (i32, i32) {
    %c0_i32 = arith.constant 0 : i32
    %c0_i32_0 = arith.constant 0 : i32
    %c0_i32_1 = arith.constant 0 : i32
    return %c0_i32, %c0_i32_0 : i32, i32
  }
  func.func @transform_5(%arg0: i32, %arg1: i32) -> (i32, i32) {
    %c0_i32 = arith.constant 0 : i32
    %c0_i32_0 = arith.constant 0 : i32
    %c0_i32_1 = arith.constant 0 : i32
    return %c0_i32, %c0_i32_0 : i32, i32
  }
  func.func @transform_6(%arg0: i32, %arg1: i32) -> (i32, i32) {
    %c0_i32 = arith.constant 0 : i32
    %c0_i32_0 = arith.constant 0 : i32
    %c0_i32_1 = arith.constant 0 : i32
    return %c0_i32, %c0_i32_0 : i32, i32
  }
  func.func @transform_7(%arg0: i32, %arg1: i32) -> (i32, i32) {
    %c0_i32 = arith.constant 0 : i32
    %c0_i32_0 = arith.constant 0 : i32
    %c0_i32_1 = arith.constant 0 : i32
    return %c0_i32, %c0_i32_0 : i32, i32
  }
  func.func @transform_8(%arg0: i32, %arg1: i32) -> (i32, i32) {
    %c0_i32 = arith.constant 0 : i32
    %c0_i32_0 = arith.constant 0 : i32
    %c0_i32_1 = arith.constant 0 : i32
    return %c0_i32, %c0_i32_0 : i32, i32
  }
  func.func @transform_9(%arg0: i32, %arg1: i32) -> (i32, i32) {
    %c0_i32 = arith.constant 0 : i32
    %c0_i32_0 = arith.constant 0 : i32
    %c0_i32_1 = arith.constant 0 : i32
    return %c0_i32, %c0_i32_0 : i32, i32
  }
  func.func @transform_10(%arg0: i32, %arg1: i32) -> (i32, i32) {
    %c0_i32 = arith.constant 0 : i32
    %c0_i32_0 = arith.constant 0 : i32
    %c0_i32_1 = arith.constant 0 : i32
    return %c0_i32, %c0_i32_0 : i32, i32
  }
  func.func @transform_11(%arg0: i32, %arg1: i32) -> (i32, i32, i32) {
    %c0_i32 = arith.constant 0 : i32
    %c0_i32_0 = arith.constant 0 : i32
    return %arg0, %c0_i32, %arg1 : i32, i32, i32
  }
}

</mosaic_0001>

<bundles_post_ra>
// kernel: tpu_custom_call.1
= control target key start
LH: loop header
LB: loop body
LE: loop exit
PB: predicated region body
PF: predicated region fallthrough
CT: control target
= control target key end

     0   :  { %s2334_s0 = inlined_call_operand.vmem [shape: f32[2,1,16], index: 0, kind: input, shape index: {}]   ;;  %s2335_s1 = inlined_call_operand.vmem [shape: f32[2,2,128], index: 1, kind: input, shape index: {}]   ;;  %s2336_s2 = inlined_call_operand.vmem [shape: f32[16,128], index: 2, kind: input, shape index: {}]   ;;  %s2337_s3 = inlined_call_operand.vmem [shape: f32[1,128], index: 3, kind: input, shape index: {}]   ;;  %s2338_s4 = inlined_call_operand.vmem [shape: f32[128,128], index: 4, kind: input, shape index: {}]   ;;  %s2339_s5 = inlined_call_operand.vmem [shape: f32[1,128], index: 5, kind: input, shape index: {}]   ;;  %s2340_s6 = inlined_call_operand.vmem [shape: f32[128,2], index: 6, kind: input, shape index: {}]   ;;  %s2341_s7 = inlined_call_operand.vmem [shape: f32[128,1], index: 7, kind: input, shape index: {}]   ;;  %s2342_s8 = inlined_call_operand.vmem [shape: bf16[128,128], index: 8, kind: input, shape index: {}]   ;;  %s2343_s9 = inlined_call_operand.vmem [shape: f32[128,1], index: 9, kind: input, shape index: {}]   ;;  %s2344_s10 = inlined_call_operand.<no memory space> [shape: f32[1,1], index: 10, kind: input, shape index: {}]   ;;  %s2345_s11 = inlined_call_operand.hbm [shape: f32[2,1,128], index: 11, kind: output, shape index: {}]  }
   0x1   :  { %2346 = sst [smem:[#allocation6_spill]] %s2334_s0  ;;  %v16_v0 = vstv %s2344_s10 }
   0x2   :  { %17 = vst [vmem:[#allocation2] sm:$0x1] %v16_v0 }
   0x3   :  { %18 = vsyncpa [#allocation4], 0 }
   0x4   :  { %20 = vsyncpa [#allocation4 + $0x1], 0  ;;  %s1852_s19 = smov 0   ;;  %s1854_s20 = smov 0  }
   0x5   :  { %s1856_s21 = smov 0   ;;  %s1858_s22 = smov 0  }
   0x6   :  { %s1860_s23 = smov 0   ;;  %s1862_s24 = smov 0  }
   0x7 LB: > { %s1386_s10 = sadd.s32 4294967295, %s1781_s24   ;;  %s1387_s25 = sadd.s32 4294967294, %s1781_s24   ;;  %s1781_s24 = sphi %s1862_s24, %s26_s24   ;;  %s1777_s23 = sphi %s1860_s23, %s2354_s23   ;;  %s1773_s22 = sphi %s1858_s22, %s2353_s22   ;;  %s1769_s21 = sphi %s1856_s21, %s2352_s21   ;;  %s1765_s20 = sphi %s1854_s20, %s2351_s20   ;;  %s1761_s19 = sphi %s1852_s19, %s2350_s19  }
   0x8   : > { %s38_s26 = sadd.s32 1, %s1777_s23  ;;  %s290_s27 = sadd.s32 1, %s1769_s21 }
   0x9   : > { %p40_p0 = scmp.ge.s32.totalorder %s38_s26, 2  ;;  %p300_p1 = scmp.ne.s32.totalorder %s1769_s21, %s1765_s20 }
   0xa   : > { %p301_p2 = scmp.eq.s32.totalorder %s1386_s10, 1  ;;  %p306_p3 = scmp.ne.s32.totalorder %s1765_s20, %s1761_s19 }
   0xb   : > { %s2356_s26 = smov (%p40_p0, %s38_s26), 0  ;;  %p307_p5 = scmp.eq.s32.totalorder %s1387_s25, 1 }
   0xc   : > { %p1892_p4 = por %p301_p2, %p300_p1  ;;  %s285_s29 = ssub.s32 %s1777_s23, %s2356_s26 }
   0xd   : > { %p1390_p6 = scmp.ge.s32.totalorder %s1781_s24, 1  ;;  %p288_p7 = scmp.eq.s32.totalorder %s285_s29, 0 }
   0xe   : > { %p1899_p8 = por %p307_p5, %p306_p3  ;;  %p368_p9 = scmp.lt.s32.totalorder %s1781_s24, 3 }
   0xf   : > { %s1905_s12 = scalar_select %p288_p7, %s1769_s21, %s290_s27  }
  0x10   : > { %p369_p10 = pnand %p1390_p6, %p368_p9 }
  0x11   : > { %v426_v1 = vld [vmem:[%s2340_s6 + $0x10] sm:$0xff] (!%p369_p10)  ;;  %v424_v2 = vld [vmem:[%s2340_s6] sm:$0xff] (!%p369_p10)  ;;  %v1783_v3 = vmov (!%p369_p10), 1   ;;  %v425_v5 = vld [vmem:[%s2340_s6 + $0x8] sm:$0xff] (!%p369_p10)  ;;  %v1784_v6 = vmov (!%p369_p10), 0.0|0.0   ;;  %vm1785_vm0 = vmmov (!%p369_p10), 0   ;;  %v520_v63 = vlaneseq (!%p369_p10) }
  0x12   : > { %372 = sbr.rel (%p369_p10) target bundleno = 772 (0x304), region = 64  ;;  %1679 = vset.pattern.permute.xlu0 (!%p369_p10), %v1783_v3  ;;  %1677 = vset.pattern.permute.xlu1 (!%p369_p10), %v1783_v3  ;;  %v428_v4 = vld [vmem:[%s2340_s6 + $0x20] sm:$0xff] (!%p369_p10)  ;;  %v1786_v7 = vmov (!%p369_p10), 0.0   ;;  %p412_p11 = scmp.lt.s32.totalorder (!%p369_p10), %s1773_s22, 1  ;;  %v430_v8 = vld [vmem:[%s2340_s6 + $0x30] sm:$0xff] (!%p369_p10)  ;;  %v427_v9 = vld [vmem:[%s2340_s6 + $0x18] sm:$0xff] (!%p369_p10) }
  0x13   : > { %549 = vperm.xlu0 (!%p369_p10), %1679, %v426_v1   ;;  %541 = vperm.xlu1 (!%p369_p10), %1677, %v424_v2   ;;  %v1787_v10 = vmov (!%p369_p10), 0   ;;  %v1050_v11 = vld [vmem:[%s2336_s2] sm:$0xff] (!%p369_p10)  ;;  %v1051_v13 = vld [vmem:[%s2336_s2 + $0x8] sm:$0xff] (!%p369_p10)  ;;  %s2349_s0 = sld [smem:[#allocation6_spill]] (!%p369_p10)  ;;  %vm1053_vm1 = vcmask (!%p369_p10), 130048   ;;  %v434_v16 = vld [vmem:[%s2340_s6 + $0x50] sm:$0xff] (!%p369_p10) }
  0x14   : > { %1566 = vmatprep.subr.bf16.mxu1 (!%p369_p10), %v1784_v6  ;;  %1493 = vmatprep.mubr.msk.f32.mxu1 (!%p369_p10), %vm1785_vm0, %v1786_v7  ;;  %v432_v12 = vld [vmem:[%s2340_s6 + $0x40] sm:$0xff] (!%p369_p10)  ;;  %v1567_v14 = vpack.c.bf16 (!%p369_p10), %v1051_v13, %v1050_v11  ;;  %v1968_v19 = vld [vmem:[%s2340_s6 + $0x70] sm:$0xff] (!%p369_p10)  ;;  %v429_v20 = vld [vmem:[%s2340_s6 + $0x28] sm:$0xff] (!%p369_p10)  ;;  %s410_s14 = sand.u32 (!%p369_p10), 1, %s1765_s20  }
  0x15   : > { %v640_v17 = vld [vmem:[%s2341_s7] sm:$0xff] (!%p369_p10)  ;;  %v642_v21 = vld [vmem:[%s2341_s7 + $0x10] sm:$0xff] (!%p369_p10)  ;;  %v641_v22 = vld [vmem:[%s2341_s7 + $0x8] sm:$0xff] (!%p369_p10) }
  0x16   : > { %1568 = vmatpush3.bf16.msra.mxu1 (!%p369_p10), %v1567_v14  ;;  %v1959_v18 = vld [vmem:[%s2340_s6 + $0x60] sm:$0xff] (!%p369_p10)  ;;  %v643_v23 = vld [vmem:[%s2341_s7 + $0x18] sm:$0xff] (!%p369_p10)  ;;  %v645_v25 = vld [vmem:[%s2341_s7 + $0x28] sm:$0xff] (!%p369_p10) }
  0x17   : > { %557 = vperm.xlu0 (!%p369_p10), %1679, %v428_v4   ;;  %545 = vperm.xlu1 (!%p369_p10), %1677, %v425_v5   ;;  %v431_v24 = vld [vmem:[%s2340_s6 + $0x38] sm:$0xff] (!%p369_p10)  ;;  %v644_v27 = vld [vmem:[%s2341_s7 + $0x20] sm:$0xff] (!%p369_p10)  ;;  %v649_v28 = vld [vmem:[%s2341_s7 + $0x48] sm:$0xff] (!%p369_p10) }
  0x18   : > { %1569 = vmatprep.subr.bf16.mxu1 (!%p369_p10), %v1784_v6  ;;  %v647_v26 = vld [vmem:[%s2341_s7 + $0x38] sm:$0xff] (!%p369_p10)  ;;  %v433_v30 = vld [vmem:[%s2340_s6 + $0x48] sm:$0xff] (!%p369_p10)  ;;  %v792_v32 = vld [vmem:[%s2343_s9] sm:$0xff] (!%p369_p10) }
  0x19   : > { %s1929_s13 = scalar_select %p412_p11, %s1773_s22, 1  ;;  %v651_v29 = vld [vmem:[%s2341_s7 + $0x58] sm:$0xff]  ;;  %v653_v31 = vld [vmem:[%s2341_s7 + $0x68] sm:$0xff]  ;;  %v794_v33 = vld [vmem:[%s2343_s9 + $0x10] sm:$0xff] }
  0x1a   : > { %v646_v34 = vld [vmem:[%s2341_s7 + $0x30] sm:$0xff]  ;;  %v796_v35 = vld [vmem:[%s2343_s9 + $0x20] sm:$0xff]  ;;  %v435_v37 = vld [vmem:[%s2340_s6 + $0x58] sm:$0xff] }
  0x1b   : > { %565 = vperm.xlu0 %1679, %v430_v8   ;;  %1678 = vset.pattern.permute.xlu1 %v1787_v10  ;;  %s414_s15 = scalar_lea.vmem %s2349_s0, %s1929_s13  ;;  %v798_v36 = vld [vmem:[%s2343_s9 + $0x30] sm:$0xff]  ;;  %v800_v38 = vld [vmem:[%s2343_s9 + $0x40] sm:$0xff]  ;;  %v437_v43 = vld [vmem:[%s2340_s6 + $0x68] sm:$0xff]  ;;  %s1391_s18 = sshll.u32 %s1929_s13, 1 }
  0x1c   : > { %457 = vperm.xlu1 %1678, %v427_v9   ;;  %v1049_v15 = vld [vmem:[%s414_s15] sm:$0x1]  ;;  %v802_v39 = vld [vmem:[%s2343_s9 + $0x50] sm:$0xff]  ;;  %v439_v46 = vld [vmem:[%s2340_s6 + $0x78] sm:$0xff]  ;;  %s421_s13 = scalar_lea.vmem %s2335_s1, %s1391_s18  ;;  %s1401_s15 = sshll.u32 %s1773_s22, 4 }
  0x1d   : > { %1494 = vmatmul.mubr.msk.f32.vlgmr.msra.gmra.mrb[0].mxu1 %vm1053_vm1, %v1049_v15  ;;  %v648_v40 = vld [vmem:[%s2341_s7 + $0x40] sm:$0xff]  ;;  %v806_v42 = vld [vmem:[%s2343_s9 + $0x70] sm:$0xff]  ;;  %v655_v53 = vld [vmem:[%s2341_s7 + $0x78] sm:$0xff]  ;;  %s411_s18 = scalar_lea.vmem [#allocation3], %s410_s14  ;;  %s2287_s25 = scalar_lea.hbm %s2345_s11, %s1401_s15 }
  0x1e   : > { %1528 = vmatprep.mubr.msk.f32.mxu1 %vm1785_vm0, %v1786_v7  ;;  %v804_v41 = vld [vmem:[%s2343_s9 + $0x60] sm:$0xff]  ;;  %v650_v45 = vld [vmem:[%s2341_s7 + $0x50] sm:$0xff]  ;;  %v793_v56 = vld [vmem:[%s2343_s9 + $0x8] sm:$0xff]  ;;  %s1310_s16 = sshll.u32 %s411_s18, 4  ;;  %s1297_s22 = scalar_lea.sflag [#allocation4], %s410_s14  ;;  %s2289_s16 = int_to_ptr.vmem [resolvable:$true] %s1310_s16 }
  0x1f   : > { %573 = vperm.xlu0 %1679, %v432_v12   ;;  %v1215_v44 = vld [vmem:[#allocation2] sm:$0x1]  ;;  %v654_v50 = vld [vmem:[%s2341_s7 + $0x70] sm:$0xff]  ;;  %v795_v58 = vld [vmem:[%s2343_s9 + $0x18] sm:$0xff]  ;;  %s1703_s27 = scalar_lea.vmem %s2289_s16, 16 }
  0x20   : > { %1680 = vset.pattern.permute.xlu1 %v1783_v3  ;;  %v652_v47 = vld [vmem:[%s2341_s7 + $0x60] sm:$0xff]  ;;  %v797_v62 = vld [vmem:[%s2343_s9 + $0x28] sm:$0xff]  ;;  %v1131_v13 = vld [vmem:[%s2338_s4 + $0x18] sm:$0xff]  ;;  %p1704_p12 = scmp.ne.s32.totalorder %s2289_s16, %s1703_s27 }
  0x21   : > { %553 = vperm.xlu1 %1680, %v427_v9   ;;  %v1695_v60 = vld [vmem:[%s2342_s8] sm:$0xff]   ;;  %v801_v11 = vld [vmem:[%s2343_s9 + $0x48] sm:$0xff] }
  0x22   : > { %1473 = vmatprep.mubr.bf16.mxu0 %v1695_v60  ;;  %v1140_v60 = vld [vmem:[%s2338_s4 + $0x60] sm:$0xff]  ;;  %p1705_p13 = pnand %p1704_p12, %p1892_p4 }
  0x23   : > { %581 = vperm.xlu0 %1679, %v434_v16  }
  0x24   : > { %p1706_p0 = pneg %p1705_p13 }
  0x25   : > { %1681 = vset.pattern.permute.xlu1 %v1787_v10 }
  0x26   : > { %658 = vperm.xlu1 %1681, %v640_v17   ;;  %v423_v17 = vld [vmem:[%s421_s13] sm:$0x3]  ;;  %s1788_s13 = smov [#allocation3]  }
  0x27   : > { %589 = vperm.xlu0 %1679, %v1959_v18   ;;  %s1707_s29 = sshll.u32 %s1788_s13, 4  ;;  %s1708_s29 = int_to_ptr.vmem [resolvable:$false] %s1707_s29 }
  0x28   : > { %s1709_s0 = scalar_lea.vmem %s1708_s29, 32  ;;  %p1710_p1 = scmp.lt.s32.totalorder %s2289_s16, %s1708_s29 }
  0x29   : > { %p1711_p2 = scmp.lt.s32.totalorder %s1709_s0, %s1703_s27 }
  0x2a   : > { %462 = vperm.xlu1 %1681, %v428_v4   ;;  %v1129_v4 = vld [vmem:[%s2338_s4 + $0x8] sm:$0xff] }
  0x2b   : > { %597 = vperm.xlu0 %1679, %v1968_v19   ;;  %p1712_p3 = por %p1711_p2, %p1710_p1 }
  0x2d   : > { %p1713_p5 = pnand %p1712_p3, %p1706_p0 }
  0x2e   : > { %467 = vperm.xlu1 %1681, %v429_v20  }
  0x2f   : > { %1692 = vset.pattern.permute.xlu0 %v1787_v10 }
  0x30   : > { %442 = vperm.xlu0 %1692, %v424_v2   ;;  %v799_v2 = vld [vmem:[%s2343_s9 + $0x38] sm:$0xff] }
  0x32   : > { %1682 = vset.pattern.permute.xlu1 %v1783_v3 }
  0x33   : > { %561 = vperm.xlu1 %1682, %v429_v20   ;;  %v803_v20 = vld [vmem:[%s2343_s9 + $0x58] sm:$0xff] }
  0x34   : > { %447 = vperm.xlu0 %1692, %v425_v5   ;;  %v2115_v5 = vshrl.u32 %v520_v63, 7 }
  0x36   : > { %v522_v14 = vsub.s32 0, %v2115_v5  ;;  %v606_v15 = vsub.s32 1, %v2115_v5 }
  0x37   : > { %1683 = vset.pattern.permute.xlu1 %v1787_v10 }
  0x38   : > { %452 = vperm.xlu0 %1692, %v426_v1   ;;  %668 = vperm.xlu1 %1683, %v642_v21   ;;  %v1132_v21 = vld [vmem:[%s2338_s4 + $0x20] sm:$0xff] }
  0x3c   : > { %663 = vperm.xlu0 %1692, %v641_v22   ;;  %472 = vperm.xlu1 %1683, %v430_v8   ;;  %v1133_v22 = vld [vmem:[%s2338_s4 + $0x28] sm:$0xff] }
  0x40   : > { %673 = vperm.xlu0 %1692, %v643_v23   ;;  %477 = vperm.xlu1 %1683, %v431_v24   ;;  %v2150_v23 = vrot.slane %v423_v17, %v522_v14 }
  0x44   : > { %683 = vperm.xlu0 %1692, %v645_v25   ;;  %1684 = vset.pattern.permute.xlu1 %v1783_v3  ;;  %v1576_v25 = vpack.c.bf16 %v1133_v22, %v1132_v21 }
  0x45   : > { %569 = vperm.xlu1 %1684, %v431_v24   ;;  %v2152_v24 = vrot.slane %v423_v17, %v606_v15 }
  0x48   : > { %693 = vperm.xlu0 %1692, %v647_v26  }
  0x49   : > { %1685 = vset.pattern.permute.xlu1 %v1787_v10 }
  0x4a   : > { %678 = vperm.xlu1 %1685, %v644_v27  }
  0x4c   : > { %703 = vperm.xlu0 %1692, %v649_v28  }
  0x4e   : > { %482 = vperm.xlu1 %1685, %v432_v12   ;;  %v1130_v12 = vld [vmem:[%s2338_s4 + $0x10] sm:$0xff] }
  0x50   : > { %713 = vperm.xlu0 %1692, %v651_v29   ;;  %v805_v29 = vld [vmem:[%s2343_s9 + $0x68] sm:$0xff] }
  0x52   : > { %487 = vperm.xlu1 %1685, %v433_v30  }
  0x54   : > { %723 = vperm.xlu0 %1692, %v653_v31   ;;  %v1135_v31 = vld [vmem:[%s2338_s4 + $0x38] sm:$0xff] }
  0x56   : > { %1686 = vset.pattern.permute.xlu1 %v1783_v3 }
  0x57   : > { %577 = vperm.xlu1 %1686, %v433_v30   ;;  %v1134_v30 = vld [vmem:[%s2338_s4 + $0x30] sm:$0xff] }
  0x58   : > { %810 = vperm.xlu0 %1692, %v792_v32  }
  0x5b   : > { %1687 = vset.pattern.permute.xlu1 %v1787_v10 }
  0x5c   : > { %820 = vperm.xlu0 %1692, %v794_v33   ;;  %688 = vperm.xlu1 %1687, %v646_v34   ;;  %v1579_v33 = vpack.c.bf16 %v1135_v31, %v1134_v30 }
  0x60   : > { %830 = vperm.xlu0 %1692, %v796_v35   ;;  %492 = vperm.xlu1 %1687, %v434_v16   ;;  %v1573_v16 = vpack.c.bf16 %v1131_v13, %v1130_v12  ;;  %v1143_v12 = vld [vmem:[%s2338_s4 + $0x78] sm:$0xff] }
  0x64   : > { %840 = vperm.xlu0 %1692, %v798_v36   ;;  %497 = vperm.xlu1 %1687, %v435_v37  }
  0x68   : > { %850 = vperm.xlu0 %1692, %v800_v38   ;;  %1688 = vset.pattern.permute.xlu1 %v1783_v3 }
  0x69   : > { %585 = vperm.xlu1 %1688, %v435_v37  }
  0x6c   : > { %860 = vperm.xlu0 %1692, %v802_v39   ;;  %v807_v39 = vld [vmem:[%s2343_s9 + $0x78] sm:$0xff] }
  0x6d   : > { %1689 = vset.pattern.permute.xlu1 %v1787_v10 }
  0x6e   : > { %698 = vperm.xlu1 %1689, %v648_v40   ;;  %v1136_v40 = vld [vmem:[%s2338_s4 + $0x40] sm:$0xff] }
  0x70   : > { %870 = vperm.xlu0 %1692, %v804_v41   ;;  %v1137_v41 = vld [vmem:[%s2338_s4 + $0x48] sm:$0xff] }
  0x72   : > { %502 = vperm.xlu1 %1689, %v1959_v18  }
  0x74   : > { %880 = vperm.xlu0 %1692, %v806_v42  }
  0x76   : > { %507 = vperm.xlu1 %1689, %v437_v43  }
  0x78   : > { %1218 = vperm.xlu0 %1692, %v1215_v44   ;;  %v1582_v44 = vpack.c.bf16 %v1137_v41, %v1136_v40 }
  0x7a   : > { %1690 = vset.pattern.permute.xlu1 %v1783_v3 }
  0x7b   : > { %593 = vperm.xlu1 %1690, %v437_v43  }
  0x7f   : > { %1691 = vset.pattern.permute.xlu1 %v1787_v10 }
  0x80   : > { %708 = vperm.xlu1 %1691, %v650_v45  }
  0x84   : > { %512 = vperm.xlu1 %1691, %v1968_v19  }
  0x88   : > { %517 = vperm.xlu1 %1691, %v439_v46  }
  0x8c   : > { %1693 = vset.pattern.permute.xlu1 %v1783_v3  ;;  %v1128_v3 = vld [vmem:[%s2338_s4] sm:$0xff] }
  0x8d   : > { %601 = vperm.xlu1 %1693, %v439_v46   ;;  %v1570_v8 = vpack.c.bf16 %v1129_v4, %v1128_v3 }
  0x8f   : > { %1571 = vmatpush3.bf16.msra.mxu1 %v1570_v8 }
  0x90   : > { %1572 = vmatprep.subr.bf16.mxu1 %v1784_v6 }
  0x91   : > { %1694 = vset.pattern.permute.xlu1 %v1787_v10 }
  0x92   : > { %718 = vperm.xlu1 %1694, %v652_v47   ;;  %v2067_v48 = vpop.permute.xlu1 %541  ;;  %v2069_v49 = vpop.permute.xlu0 %549 }
  0x93   : > { %1574 = vmatpush3.bf16.msra.mxu1 %v1573_v16  ;;  %v608_v32 = vmul.f32 %v2152_v24, %v2067_v48  ;;  %v610_v34 = vmul.f32 %v2152_v24, %v2069_v49 }
  0x94   : > { %1575 = vmatprep.subr.bf16.mxu1 %v1784_v6 }
  0x96   : > { %728 = vperm.xlu1 %1694, %v654_v50   ;;  %v2074_v51 = vpop.permute.xlu1 %545  ;;  %v2076_v52 = vpop.permute.xlu0 %557 }
  0x97   : > { %1577 = vmatpush3.bf16.msra.mxu1 %v1576_v25  ;;  %v609_v42 = vmul.f32 %v2152_v24, %v2074_v51  ;;  %v1138_v51 = vld [vmem:[%s2338_s4 + $0x50] sm:$0xff]  ;;  %v612_v21 = vmul.f32 %v2152_v24, %v2076_v52 }
  0x98   : > { %1578 = vmatprep.subr.bf16.mxu1 %v1784_v6 }
  0x9a   : > { %733 = vperm.xlu1 %1694, %v655_v53   ;;  %v2081_v54 = vpop.permute.xlu0 %565 }
  0x9b   : > { %v2083_v55 = vpop.permute.xlu1 %457  ;;  %1580 = vmatpush3.bf16.msra.mxu1 %v1579_v33 }
  0x9c   : > { %1581 = vmatprep.subr.bf16.mxu1 %v1784_v6  ;;  %v527_v49 = vmul.f32 %v2150_v23, %v2083_v55  ;;  %v1141_v55 = vld [vmem:[%s2338_s4 + $0x68] sm:$0xff] }
  0x9d   : > { %v1588_v3 = vpack.c.bf16 %v1141_v55, %v1140_v60 }
  0x9e   : > { %815 = vperm.xlu1 %1694, %v793_v56   ;;  %v2088_v57 = vpop.permute.xlu0 %573  ;;  %v1139_v56 = vld [vmem:[%s2338_s4 + $0x58] sm:$0xff] }
  0x9f   : > { %1583 = vmatpush3.bf16.msra.mxu1 %v1582_v44 }
  0xa0   : > { %v2093_v59 = vpop.permute.xlu1 %553  ;;  %1584 = vmatprep.subr.bf16.mxu1 %v1784_v6 }
  0xa1   : > { %v611_v45 = vmul.f32 %v2152_v24, %v2093_v59  ;;  %v1585_v59 = vpack.c.bf16 %v1139_v56, %v1138_v51 }
  0xa2   : > { %825 = vperm.xlu1 %1694, %v795_v58   ;;  %v2098_v61 = vpop.permute.xlu0 %581 }
  0xa3   : > { %1586 = vmatpush3.bf16.msra.mxu1 %v1585_v59 }
  0xa4   : > { %1587 = vmatprep.subr.bf16.mxu1 %v1784_v6 }
  0xa5   : > { %v659_v0 = vpop.permute.xlu1 %658 }
  0xa6   : > { %835 = vperm.xlu1 %1694, %v797_v62   ;;  %v2103_v1 = vpop.permute.xlu0 %589  ;;  %v627_v62 = vadd.f32 %v611_v45, %v527_v49 }
  0xa7   : > { %1589 = vmatpush3.bf16.msra.mxu1 %v1588_v3 }
  0xa8   : > { %1590 = vmatprep.subr.bf16.mxu1 %v1784_v6 }
  0xa9   : > { %v2117_v9 = vpop.permute.xlu1 %462 }
  0xaa   : > { %845 = vperm.xlu1 %1694, %v799_v2   ;;  %v2122_v10 = vpop.permute.xlu0 %597  ;;  %v528_v22 = vmul.f32 %v2150_v23, %v2117_v9 }
  0xac   : > { %v628_v31 = vadd.f32 %v612_v21, %v528_v22 }
  0xad   : > { %v2136_v18 = vpop.permute.xlu1 %467 }
  0xae   : > { %855 = vperm.xlu1 %1694, %v801_v11   ;;  %v1142_v11 = vld [vmem:[%s2338_s4 + $0x70] sm:$0xff]  ;;  %v529_v25 = vmul.f32 %v2150_v23, %v2136_v18 }
  0xaf   : > { %v443_v19 = vpop.permute.xlu0 %442 }
  0xb0   : > { %v524_v26 = vmul.f32 %v2150_v23, %v443_v19 }
  0xb2   : > { %865 = vperm.xlu1 %1694, %v803_v20   ;;  %v562_v27 = vpop.permute.xlu1 %561  ;;  %v624_v35 = vadd.f32 %v608_v32, %v524_v26  ;;  %v1591_v20 = vpack.c.bf16 %v1143_v12, %v1142_v11  ;;  %v1052_v12 = vld [vmem:[%s2337_s3] sm:$0x1] }
  0xb3   : > { %v448_v28 = vpop.permute.xlu0 %447  ;;  %v613_v16 = vmul.f32 %v2152_v24, %v562_v27 }
  0xb4   : > { %v525_v36 = vmul.f32 %v2150_v23, %v448_v28  ;;  %v736_v48 = vadd.f32 %v659_v0, %v624_v35  ;;  %1592 = vmatpush3.bf16.msra.mxu1 %v1591_v20 }
  0xb6   : > { %875 = vperm.xlu1 %1694, %v805_v29   ;;  %v625_v47 = vadd.f32 %v609_v42, %v525_v36  ;;  %v752_v2 = vmax.f32 %v736_v48, 0.0  ;;  %v629_v29 = vadd.f32 %v613_v16, %v529_v25 }
  0xb7   : > { %v453_v37 = vpop.permute.xlu0 %452  ;;  %v669_v38 = vpop.permute.xlu1 %668 }
  0xb8   : > { %v526_v43 = vmul.f32 %v2150_v23, %v453_v37 }
  0xba   : > { %v626_v46 = vadd.f32 %v610_v34, %v526_v43  ;;  %885 = vperm.xlu1 %1694, %v807_v39  }
  0xbb   : > { %v664_v50 = vpop.permute.xlu0 %663  ;;  %v473_v53 = vpop.permute.xlu1 %472 }
  0xbc   : > { %v737_v58 = vadd.f32 %v664_v50, %v625_v47  ;;  %v738_v63 = vadd.f32 %v669_v38, %v626_v46  ;;  %v614_v38 = vmul.f32 %v2152_v24, %v2081_v54  ;;  %v530_v39 = vmul.f32 %v2150_v23, %v473_v53 }
  0xbd   : > { %v616_v53 = vmul.f32 %v2152_v24, %v2088_v57 }
  0xbe   : > { %v753_v0 = vmax.f32 %v737_v58, 0.0  ;;  %v754_v17 = vmax.f32 %v738_v63, 0.0  ;;  %v630_v44 = vadd.f32 %v614_v38, %v530_v39  ;;  %v620_v38 = vmul.f32 %v2152_v24, %v2103_v1 }
  0xbf   : > { %v674_v4 = vpop.permute.xlu0 %673  ;;  %v478_v8 = vpop.permute.xlu1 %477 }
  0xc0   : > { %v739_v13 = vadd.f32 %v674_v4, %v627_v62  ;;  %v784_v15 = vpack.c.bf16 %v753_v0, %v752_v2  ;;  %v531_v37 = vmul.f32 %v2150_v23, %v478_v8 }
  0xc2   : > { %v755_v19 = vmax.f32 %v739_v13, 0.0  ;;  %1457 = vmatprep.subr.bf16.mxu0 %v784_v15 }
  0xc3   : > { %1458 = vmatpush3.bf16.msra.mxu0 %v784_v15  ;;  %v684_v27 = vpop.permute.xlu0 %683 }
  0xc4   : > { %v785_v26 = vpack.c.bf16 %v755_v19, %v754_v17  ;;  %v570_v28 = vpop.permute.xlu1 %569  ;;  %v741_v30 = vadd.f32 %v684_v27, %v629_v29 }
  0xc5   : > { %v615_v18 = vmul.f32 %v2152_v24, %v570_v28 }
  0xc6   : > { %1459 = vmatprep.subr.bf16.mxu0 %v785_v26  ;;  %v757_v34 = vmax.f32 %v741_v30, 0.0 }
  0xc7   : > { %1460 = vmatpush3.bf16.msra.mxu0 %v785_v26  ;;  %v631_v40 = vadd.f32 %v615_v18, %v531_v37  ;;  %v694_v42 = vpop.permute.xlu0 %693  ;;  %v618_v26 = vmul.f32 %v2152_v24, %v2098_v61 }
  0xc9   : > { %v679_v32 = vpop.permute.xlu1 %678  ;;  %v743_v43 = vadd.f32 %v694_v42, %v631_v40 }
  0xca   : > { %v740_v33 = vadd.f32 %v679_v32, %v628_v31 }
  0xcb   : > { %v759_v47 = vmax.f32 %v743_v43, 0.0  ;;  %v704_v55 = vpop.permute.xlu0 %703 }
  0xcc   : > { %v756_v35 = vmax.f32 %v740_v33, 0.0 }
  0xcd   : > { %v483_v52 = vpop.permute.xlu1 %482 }
  0xce   : > { %v786_v36 = vpack.c.bf16 %v757_v34, %v756_v35  ;;  %v532_v58 = vmul.f32 %v2150_v23, %v483_v52 }
  0xcf   : > { %v714_v28 = vpop.permute.xlu0 %713 }
  0xd0   : > { %1461 = vmatprep.subr.bf16.mxu0 %v786_v36  ;;  %v632_v63 = vadd.f32 %v616_v53, %v532_v58 }
  0xd1   : > { %v488_v9 = vpop.permute.xlu1 %487  ;;  %1462 = vmatpush3.bf16.msra.mxu0 %v786_v36 }
  0xd2   : > { %v533_v54 = vmul.f32 %v2150_v23, %v488_v9 }
  0xd3   : > { %v724_v39 = vpop.permute.xlu0 %723 }
  0xd6   : > { %v578_v41 = vpop.permute.xlu1 %577 }
  0xd7   : > { %v617_v56 = vmul.f32 %v2152_v24, %v578_v41 }
  0xd9   : > { %v633_v59 = vadd.f32 %v617_v56, %v533_v54 }
  0xdb   : > { %v689_v45 = vpop.permute.xlu1 %688  ;;  %v745_v62 = vadd.f32 %v704_v55, %v633_v59 }
  0xdc   : > { %v742_v46 = vadd.f32 %v689_v45, %v630_v44  ;;  %v622_v45 = vmul.f32 %v2152_v24, %v2122_v10  ;;  %v1696_v10 = vld [vmem:[%s2342_s8 + $0x8] sm:$0xff]  }
  0xdd   : > { %v761_v4 = vmax.f32 %v745_v62, 0.0  ;;  %v1699_v62 = vld [vmem:[%s2342_s8 + $0x20] sm:$0xff]  }
  0xde   : > { %v758_v48 = vmax.f32 %v742_v46, 0.0 }
  0xdf   : > { %v493_v49 = vpop.permute.xlu1 %492 }
  0xe0   : > { %v787_v50 = vpack.c.bf16 %v759_v47, %v758_v48  ;;  %v534_v21 = vmul.f32 %v2150_v23, %v493_v49 }
  0xe2   : > { %1463 = vmatprep.subr.bf16.mxu0 %v787_v50  ;;  %v634_v29 = vadd.f32 %v618_v26, %v534_v21 }
  0xe3   : > { %v498_v51 = vpop.permute.xlu1 %497  ;;  %1464 = vmatpush3.bf16.msra.mxu0 %v787_v50 }
  0xe4   : > { %v535_v19 = vmul.f32 %v2150_v23, %v498_v51 }
  0xe8   : > { %v586_v60 = vpop.permute.xlu1 %585 }
  0xe9   : > { %v619_v15 = vmul.f32 %v2152_v24, %v586_v60 }
  0xeb   : > { %v635_v22 = vadd.f32 %v619_v15, %v535_v19 }
  0xed   : > { %v699_v0 = vpop.permute.xlu1 %698  ;;  %v747_v27 = vadd.f32 %v714_v28, %v635_v22 }
  0xee   : > { %v744_v2 = vadd.f32 %v699_v0, %v632_v63  ;;  %v1700_v63 = vld [vmem:[%s2342_s8 + $0x28] sm:$0xff]   ;;  %v1701_v0 = vld [vmem:[%s2342_s8 + $0x30] sm:$0xff]  }
  0xef   : > { %v763_v33 = vmax.f32 %v747_v27, 0.0 }
  0xf0   : > { %v760_v3 = vmax.f32 %v744_v2, 0.0  ;;  %v1123_v57 = vpop.f32.mrb[0].mxu1  ;;  %v1702_v2 = vld [vmem:[%s2342_s8 + $0x38] sm:$0xff]  }
  0xf1   : > { %v503_v8 = vpop.permute.xlu1 %502  ;;  %v1124_v16 = vadd.f32 %v1123_v57, %v1052_v12  ;;  %v1495_v17 = vpop.f32.mrb[1].mxu1 }
  0xf2   : > { %v788_v11 = vpack.c.bf16 %v761_v4, %v760_v3  ;;  %v536_v18 = vmul.f32 %v2150_v23, %v503_v8  ;;  %v811_v8 = vpop.permute.xlu0 %810 }
  0xf3   : > { %v1127_v20 = vmax.f32 %v1124_v16, 0.0 }
  0xf4   : > { %1465 = vmatprep.subr.bf16.mxu0 %v788_v11  ;;  %v636_v41 = vadd.f32 %v620_v38, %v536_v18 }
  0xf5   : > { %v508_v13 = vpop.permute.xlu1 %507  ;;  %1466 = vmatpush3.bf16.msra.mxu0 %v788_v11  ;;  %1529 = vmatmul.mubr.f32.vlgmr.msra.gmra.mrb[2].mxu1 %v1127_v20 }
  0xf6   : > { %v537_v9 = vmul.f32 %v2150_v23, %v508_v13  ;;  %v821_v12 = vpop.permute.xlu0 %820 }
  0xfa   : > { %v594_v25 = vpop.permute.xlu1 %593  ;;  %v831_v57 = vpop.permute.xlu0 %830 }
  0xfb   : > { %v621_v36 = vmul.f32 %v2152_v24, %v594_v25 }
  0xfd   : > { %v637_v37 = vadd.f32 %v621_v36, %v537_v9 }
  0xfe   : > { %v841_v16 = vpop.permute.xlu0 %840 }
  0xff   : > { %v709_v30 = vpop.permute.xlu1 %708  ;;  %v749_v40 = vadd.f32 %v724_v39, %v637_v37 }
 0x100   : > { %v746_v31 = vadd.f32 %v709_v30, %v634_v29 }
 0x101   : > { %v765_v48 = vmax.f32 %v749_v40, 0.0 }
 0x102   : > { %v762_v32 = vmax.f32 %v746_v31, 0.0  ;;  %v851_v30 = vpop.permute.xlu0 %850 }
 0x103   : > { %v513_v34 = vpop.permute.xlu1 %512 }
 0x104   : > { %v789_v35 = vpack.c.bf16 %v763_v33, %v762_v32  ;;  %v538_v43 = vmul.f32 %v2150_v23, %v513_v34 }
 0x106   : > { %1467 = vmatprep.subr.bf16.mxu0 %v789_v35  ;;  %v638_v56 = vadd.f32 %v622_v45, %v538_v43  ;;  %v861_v39 = vpop.permute.xlu0 %860 }
 0x107   : > { %v518_v52 = vpop.permute.xlu1 %517  ;;  %1468 = vmatpush3.bf16.msra.mxu0 %v789_v35 }
 0x108   : > { %v539_v50 = vmul.f32 %v2150_v23, %v518_v52  ;;  %v1697_v23 = vld [vmem:[%s2342_s8 + $0x10] sm:$0xff]  }
 0x10c   : > { %v602_v61 = vpop.permute.xlu1 %601 }
 0x10d   : > { %v623_v46 = vmul.f32 %v2152_v24, %v602_v61  ;;  %v1698_v24 = vld [vmem:[%s2342_s8 + $0x18] sm:$0xff]  }
 0x10f   : > { %v639_v54 = vadd.f32 %v623_v46, %v539_v50 }
 0x111   : > { %v719_v42 = vpop.permute.xlu1 %718 }
 0x112   : > { %v748_v44 = vadd.f32 %v719_v42, %v636_v41 }
 0x114   : > { %v764_v47 = vmax.f32 %v748_v44, 0.0 }
 0x115   : > { %v729_v49 = vpop.permute.xlu1 %728 }
 0x116   : > { %v790_v51 = vpack.c.bf16 %v765_v48, %v764_v47  ;;  %v750_v1 = vadd.f32 %v729_v49, %v638_v56 }
 0x118   : > { %1469 = vmatprep.subr.bf16.mxu0 %v790_v51  ;;  %v766_v59 = vmax.f32 %v750_v1, 0.0 }
 0x119   : > { %v734_v53 = vpop.permute.xlu1 %733  ;;  %1470 = vmatpush3.bf16.msra.mxu0 %v790_v51  ;;  %v871_v51 = vpop.permute.xlu0 %870 }
 0x11a   : > { %v751_v58 = vadd.f32 %v734_v53, %v639_v54 }
 0x11c   : > { %v767_v60 = vmax.f32 %v751_v58, 0.0 }
 0x11d   : > { %v816_v11 = vpop.permute.xlu1 %815 }
 0x11e   : > { %v791_v55 = vpack.c.bf16 %v767_v60, %v766_v59 }
 0x120   : > { %1471 = vmatprep.subr.bf16.mxu0 %v791_v55 }
 0x121   : > { %1472 = vmatpush3.bf16.msra.mxu0 %v791_v55  ;;  %v826_v13 = vpop.permute.xlu1 %825 }
 0x122   : > { %1593 = vmatprep.subr.bf16.mxu0 %v1784_v6 }
 0x124   : > { %1474 = vmatmul.mubr.bf16.vlgmr.msra.gmra.mrb[0].mxu0 %v1696_v10 }
 0x125   : > { %1477 = vmatprep.mubr.bf16.mxu0 %v1697_v23  ;;  %v836_v15 = vpop.permute.xlu1 %835 }
 0x129   : > { %v846_v21 = vpop.permute.xlu1 %845 }
 0x12c   : > { %1478 = vmatmul.mubr.bf16.gmra.mrb[4].mxu0 %v1698_v24 }
 0x12d   : > { %1481 = vmatprep.mubr.bf16.mxu0 %v1699_v62  ;;  %v856_v34 = vpop.permute.xlu1 %855  ;;  %v881_v62 = vpop.permute.xlu0 %880 }
 0x131   : > { %v866_v43 = vpop.permute.xlu1 %865 }
 0x134   : > { %1482 = vmatmul.mubr.bf16.gmra.mrb[8].mxu0 %v1700_v63 }
 0x135   : > { %1485 = vmatprep.mubr.bf16.mxu0 %v1701_v0  ;;  %v876_v58 = vpop.permute.xlu1 %875 }
 0x13c   : > { %1486 = vmatmul.mubr.bf16.gmra.mrb[12].mxu0 %v1702_v2 }
 0x13d   : > { %1563 = vmatprep.mubr.msk.f32.mxu0 %vm1785_vm0, %v1786_v7 }
 0x1c8   : > { %v2267_v3 = vpop.f32.mrb[2].mxu1 }
 0x1c9   : > { %v1530_v4 = vpop.f32.mrb[3].mxu1 }
 0x1f7   : > { %v1475_v17 = vpop.f32.mrb[0].mxu0 }
 0x1f8   : > { %v979_v19 = vadd.f32 %v1475_v17, %v821_v12  ;;  %v970_v20 = vpop.f32.mrb[1].mxu0 }
 0x1f9   : > { %v971_v22 = vadd.f32 %v970_v20, %v811_v8  ;;  %v1476_v25 = vpop.f32.mrb[2].mxu0  ;;  %v886_v8 = vpop.permute.xlu1 %885 }
 0x1fa   : > { %v982_v26 = vadd.f32 %v1476_v25, %v826_v13  ;;  %v973_v28 = vpop.f32.mrb[3].mxu0  ;;  %v1035_v7 = vmax.f32 %v979_v19, 0.0  ;;  %v1144_v25 = vld [vmem:[%s2339_s5] sm:$0x1] }
 0x1fb   : > { %v974_v27 = vadd.f32 %v973_v28, %v816_v11  ;;  %v1033_v31 = vmax.f32 %v971_v22, 0.0  ;;  %v1219_v28 = vpop.permute.xlu0 %1218 }
 0x1fc   : > { %v1036_v29 = vmax.f32 %v982_v26, 0.0  ;;  %v1212_v26 = vadd.f32 %v2267_v3, %v1144_v25 }
 0x1fd   : > { %v1034_v32 = vmax.f32 %v974_v27, 0.0  ;;  %v1224_v27 = vrot.slane %v1219_v28, %v522_v14 }
 0x1fe   : > { %v1597_v33 = vpack.c.bf16 %v1036_v29, %v1035_v7 }
 0x1ff   : > { %v1594_v35 = vpack.c.bf16 %v1034_v32, %v1033_v31  ;;  %v1479_v52 = vpop.f32.mrb[4].mxu0 }
 0x200   : > { %v995_v36 = vadd.f32 %v1479_v52, %v841_v16  ;;  %v986_v9 = vpop.f32.mrb[5].mxu0 }
 0x201   : > { %v987_v18 = vadd.f32 %v986_v9, %v831_v57  ;;  %v1480_v37 = vpop.f32.mrb[6].mxu0  ;;  %1595 = vmatpush3.bf16.msra.mxu0 %v1594_v35 }
 0x202   : > { %v998_v61 = vadd.f32 %v1480_v37, %v846_v21  ;;  %v989_v38 = vpop.f32.mrb[7].mxu0  ;;  %1596 = vmatprep.subr.bf16.mxu0 %v1784_v6  ;;  %v1039_v41 = vmax.f32 %v995_v36, 0.0 }
 0x203   : > { %v990_v40 = vadd.f32 %v989_v38, %v836_v15  ;;  %v1037_v44 = vmax.f32 %v987_v18, 0.0 }
 0x204   : > { %v1040_v42 = vmax.f32 %v998_v61, 0.0 }
 0x205   : > { %v1038_v45 = vmax.f32 %v990_v40, 0.0  ;;  %1598 = vmatpush3.bf16.msra.mxu0 %v1597_v33 }
 0x206   : > { %v1603_v46 = vpack.c.bf16 %v1040_v42, %v1039_v41  ;;  %1599 = vmatprep.subr.bf16.mxu0 %v1784_v6 }
 0x207   : > { %v1600_v47 = vpack.c.bf16 %v1038_v45, %v1037_v44  ;;  %v1483_v48 = vpop.f32.mrb[8].mxu0 }
 0x208   : > { %v1011_v49 = vadd.f32 %v1483_v48, %v861_v39  ;;  %v1002_v50 = vpop.f32.mrb[9].mxu0 }
 0x209   : > { %v1003_v56 = vadd.f32 %v1002_v50, %v851_v30  ;;  %v1484_v1 = vpop.f32.mrb[10].mxu0  ;;  %1601 = vmatpush3.bf16.msra.mxu0 %v1600_v47 }
 0x20a   : > { %v1014_v54 = vadd.f32 %v1484_v1, %v866_v43  ;;  %v1005_v53 = vpop.f32.mrb[11].mxu0  ;;  %1602 = vmatprep.subr.bf16.mxu0 %v1784_v6  ;;  %v1043_v60 = vmax.f32 %v1011_v49, 0.0 }
 0x20b   : > { %v1006_v59 = vadd.f32 %v1005_v53, %v856_v34  ;;  %v1041_v10 = vmax.f32 %v1003_v56, 0.0 }
 0x20c   : > { %v1044_v55 = vmax.f32 %v1014_v54, 0.0 }
 0x20d   : > { %v1042_v23 = vmax.f32 %v1006_v59, 0.0  ;;  %1604 = vmatpush3.bf16.msra.mxu0 %v1603_v46 }
 0x20e   : > { %v1609_v24 = vpack.c.bf16 %v1044_v55, %v1043_v60  ;;  %1605 = vmatprep.subr.bf16.mxu0 %v1784_v6 }
 0x20f   : > { %v1606_v63 = vpack.c.bf16 %v1042_v23, %v1041_v10  ;;  %v1487_v0 = vpop.f32.mrb[12].mxu0 }
 0x210   : > { %v1027_v2 = vadd.f32 %v1487_v0, %v881_v62  ;;  %v1018_v4 = vpop.f32.mrb[13].mxu0 }
 0x211   : > { %v1019_v11 = vadd.f32 %v1018_v4, %v871_v51  ;;  %v1488_v12 = vpop.f32.mrb[14].mxu0  ;;  %1607 = vmatpush3.bf16.msra.mxu0 %v1606_v63 }
 0x212   : > { %v1030_v13 = vadd.f32 %v1488_v12, %v886_v8  ;;  %v1021_v57 = vpop.f32.mrb[15].mxu0  ;;  %1608 = vmatprep.subr.bf16.mxu0 %v1784_v6  ;;  %v1047_v16 = vmax.f32 %v1027_v2, 0.0 }
 0x213   : > { %v1022_v15 = vadd.f32 %v1021_v57, %v876_v58  ;;  %v1045_v19 = vmax.f32 %v1019_v11, 0.0 }
 0x214   : > { %v1048_v17 = vmax.f32 %v1030_v13, 0.0 }
 0x215   : > { %v1046_v20 = vmax.f32 %v1022_v15, 0.0  ;;  %1610 = vmatpush3.bf16.msra.mxu0 %v1609_v24 }
 0x216   : > { %v1615_v21 = vpack.c.bf16 %v1048_v17, %v1047_v16  ;;  %1611 = vmatprep.subr.bf16.mxu0 %v1784_v6 }
 0x217   : > { %v1612_v22 = vpack.c.bf16 %v1046_v20, %v1045_v19 }
 0x219   : > { %1613 = vmatpush3.bf16.msra.mxu0 %v1612_v22 }
 0x21a   : > { %1614 = vmatprep.subr.bf16.mxu0 %v1784_v6 }
 0x21d   : > { %1616 = vmatpush3.bf16.msra.mxu0 %v1615_v21 }
 0x220   : > { %1564 = vmatmul.mubr.f32.vlgmr.msra.gmra.mrb[16].mxu0 %v1212_v26 }
 0x2f3   : > { %v1291_v7 = vpop.f32.mrb[16].mxu0 }
 0x2f4   : > { %v1292_v29 = vadd.f32 %v1291_v7, %v1224_v27  ;;  %v1565_v30 = vpop.f32.mrb[17].mxu0 }
 0x2f6   : > { %1295 = vst [vmem:[%s411_s18] sm:$0x1] %v1292_v29 }
 0x2f7   : > { %1716 = shalt.err (!%p1713_p5)
}
 0x2f8   : > { %s1717_s14 = scalar_lea.hbm %s2287_s25, 16  ;;  %s1721_s17 = scalar_lea.hbm %s2345_s11, 32 }
 0x2f9   : > { %p1718_p6 = scmp.ne.s32.totalorder %s2287_s25, %s1717_s14  ;;  %p1722_p10 = scmp.lt.u32.totalorder %s2287_s25, %s2345_s11 }
 0x2fa   : > { %p1723_p11 = scmp.lt.u32.totalorder %s1721_s17, %s1717_s14  ;;  %p1725_p13 = scmp.lt.u32.totalorder %s1717_s14, %s2287_s25 }
 0x2fb   : > { %p1719_p7 = pnand %p1718_p6, %p1892_p4 }
 0x2fc   : > { %p1724_p12 = por %p1723_p11, %p1722_p10 }
 0x2fd   : > { %p1720_p9 = pneg %p1719_p7 }
 0x2fe   : > { %p1726_p0 = por %p1725_p13, %p1724_p12 }
 0x300   : > { %p1727_p1 = pnand %p1726_p0, %p1720_p9 }
 0x302   : > { %1730 = shalt.err (!%p1727_p1)
}
 0x303   : > { %1617 = dma.vmem_to_hbm [thread:$0]  (%p1892_p4), %s2289_s16, 16, %s2287_s25, %s1297_s22  }
 0x304 PF: > { %p1623_p2 = scmp.ge.s32.totalorder %s1781_s24, 2  ;;  %s1322_s0 = sand.u32 1, %s1761_s19  }
 0x305   : > { %s1323_s27 = scalar_lea.sflag [#allocation4], %s1322_s0 }
 0x306   : > { %p1620_p3 = pnand %p1623_p2, %p1899_p8 }
 0x308   : > { %1756 = dma.done.wait (!%p1620_p3), %s1323_s27, 16  }
 0x309   : > { %1758 = vsyncadd (!%p1620_p3), %s1323_s27, 4294967280  ;;  %s26_s24 = sadd.s32 1, %s1781_s24   ;;  %s2350_s19 = smov %s1765_s20 }
 0x30a   : > { %p23_p5 = scmp.ge.s32.totalorder %s26_s24, 4   ;;  %s2351_s20 = smov %s1769_s21 }
 0x30b   : > { %s2352_s21 = smov %s1905_s12  ;;  %s2353_s22 = smov %s1777_s23 }
 0x30c   : > { %s2354_s23 = smov %s2356_s26  ;;  %25 = sbr.rel (!%p23_p5) target bundleno = 7 (0x7), region = 102 }
 0x313   :  { %1327 = vsyncpa [#allocation4], 1 }
 0x314   :  { %1329 = vsyncpa [#allocation4 + $0x1], 1 }

</bundles_post_ra>
